<compile_context>
chip_gen: v5e
topology: v5e:2x2
jax: 0.10.0
libtpu: 0.0.40
codegen_flags: <defaults>
</compile_context>

<pallas_src>
import jax
import jax.numpy as jnp
from jax import lax
from jax.experimental import pallas as pl
from jax.experimental.pallas import tpu as pltpu


def _round_up(x, m):
    return ((x + m - 1) // m) * m


def _largest_divisor_at_most(n, cap):
    for d in range(min(n, cap), 0, -1):
        if n % d == 0:
            return d
    return 1


def _rnn_forecast_kernel(xproj_ref, whh_ref, wout_ref, bout_ref, out_ref, h_ref):
    # xproj_ref : (Tt, Bp, Hp) compute dtype -- precomputed x@W_ih^T + (b_ih+b_hh)
    # whh_ref   : (Hp, Hp)     compute dtype (W_hh^T, zero-padded)
    # wout_ref  : (Hp, Op)     compute dtype (W_out^T, zero-padded)
    # bout_ref  : (1, Op)      f32
    # out_ref   : (Bp, Op)     f32
    # h_ref     : (Bp, Hp)     f32 VMEM scratch, carries h across grid steps
    t = pl.program_id(0)

    @pl.when(t == 0)
    def _():
        h_ref[...] = jnp.zeros_like(h_ref)

    whh = whh_ref[...]          # loop-invariant within this grid step
    cdt = whh.dtype             # MXU operand / carry dtype (f32 or bf16)
    Tt = xproj_ref.shape[0]     # static chunk length

    def step(i, h):
        # Only the recurrent matmul + tanh sit on the serial chain; bias and
        # the input projection were folded into xproj ahead of time.
        pre = (jnp.dot(h, whh, preferred_element_type=jnp.float32)
               + xproj_ref[i].astype(jnp.float32))
        return jnp.tanh(pre).astype(cdt)

    # Chunked unroll: Tt is small and static, giving the scheduler
    # cross-step visibility without unrolling the whole sequence.
    h = lax.fori_loop(0, Tt, step, h_ref[...].astype(cdt), unroll=True)
    h_ref[...] = h.astype(h_ref.dtype)

    @pl.when(t == pl.num_programs(0) - 1)
    def _():
        out = (jnp.dot(h, wout_ref[...], preferred_element_type=jnp.float32)
               + bout_ref[...])
        out_ref[...] = out.astype(out_ref.dtype)


def prepare_params(params, compute_dtype=jnp.float32):
    """One-time weight prep (padding / transposes), hoisted out of the
    per-call forward path.  compute_dtype applies to the MXU operands of both
    the wrapper input-projection einsum and the in-kernel matmuls."""
    w_ih, w_hh = params["w_ih"], params["w_hh"]
    b_ih, b_hh = params["b_ih"], params["b_hh"]
    w_out, b_out = params["w_out"], params["b_out"]

    H, I = w_ih.shape
    O = w_out.shape[0]
    Hp = _round_up(H, 128)
    Op = _round_up(O, 128)

    f32 = jnp.float32
    wih_p = jnp.zeros((I, Hp), f32).at[:, :H].set(jnp.transpose(w_ih).astype(f32))
    whh_p = jnp.zeros((Hp, Hp), f32).at[:H, :H].set(jnp.transpose(w_hh).astype(f32))
    bias_p = jnp.zeros((Hp,), f32).at[:H].set((b_ih + b_hh).astype(f32))
    wout_p = jnp.zeros((Hp, Op), f32).at[:H, :O].set(jnp.transpose(w_out).astype(f32))
    bout_p = jnp.zeros((1, Op), f32).at[0, :O].set(b_out.astype(f32))

    return {
        "wih": wih_p.astype(compute_dtype),
        "whh": whh_p.astype(compute_dtype),
        "bias": bias_p,
        "wout": wout_p.astype(compute_dtype),
        "bout": bout_p,
        "dims": (I, H, O),
        "compute_dtype": compute_dtype,
    }


def forecasting_stock_rnn(x, prep, time_chunk=8):
    """x: (B, T, input_size) float32 -> (B, output_size) float32."""
    I, H, O = prep["dims"]
    cdt = prep["compute_dtype"]
    B, T, Ix = x.shape
    assert Ix == I, "input feature size mismatch"

    Hp = prep["whh"].shape[0]
    Op = prep["wout"].shape[1]
    Bp = _round_up(B, 8)
    Tt = _largest_divisor_at_most(T, time_chunk)   # steps per grid iteration

    # Pad the small (B,T,I) input, not the large (T,Bp,Hp) projection.
    x_p = jnp.pad(x.astype(cdt), ((0, Bp - B), (0, 0), (0, 0)))

    # Input projection hoisted out of the serial recurrence; the
    # batch-major -> time-major transpose is fused into the matmul.
    xproj = (jnp.einsum("bti,ih->tbh", x_p, prep["wih"],
                        preferred_element_type=jnp.float32)
             + prep["bias"]).astype(cdt)            # (T, Bp, Hp)

    # Explicit VMEM budget (double-buffered xproj chunk + resident weights,
    # scratch h, and the output tile), clamped well under v7x's 64 MiB.
    itemsize = jnp.dtype(cdt).itemsize
    vmem_bytes = (2 * Tt * Bp * Hp * itemsize
                  + Hp * Hp * itemsize + Hp * Op * itemsize
                  + Bp * Hp * 4 + Bp * Op * 4 + Op * 4)
    vmem_limit = int(min(max(2 * vmem_bytes, 4 << 20), 48 << 20))

    out_p = pl.pallas_call(
        _rnn_forecast_kernel,
        out_shape=jax.ShapeDtypeStruct((Bp, Op), jnp.float32),
        grid_spec=pltpu.PrefetchScalarGridSpec(
            num_scalar_prefetch=0,
            grid=(T // Tt,),
            in_specs=[
                pl.BlockSpec((Tt, Bp, Hp), lambda t: (t, 0, 0)),   # xproj chunk
                pl.BlockSpec((Hp, Hp), lambda t: (0, 0)),          # W_hh^T
                pl.BlockSpec((Hp, Op), lambda t: (0, 0)),          # W_out^T
                pl.BlockSpec((1, Op), lambda t: (0, 0)),           # b_out
            ],
            out_specs=pl.BlockSpec((Bp, Op), lambda t: (0, 0)),
            scratch_shapes=[pltpu.VMEM((Bp, Hp), jnp.float32)],    # hidden state
        ),
        compiler_params=pltpu.CompilerParams(
            dimension_semantics=("arbitrary",),     # serial recurrence axis
            vmem_limit_bytes=vmem_limit,
        ),
    )(xproj, prep["whh"], prep["wout"], prep["bout"])

    return out_p[:B, :O]


def init_params(key, input_size, hidden_size, output_size):
    """Deterministic synthetic init mirroring nn.RNN / nn.Linear shapes."""
    ks = jax.random.split(key, 6)
    k_rnn = 1.0 / jnp.sqrt(hidden_size)
    k_lin = 1.0 / jnp.sqrt(hidden_size)
    u = lambda k, shape, s: jax.random.uniform(k, shape, jnp.float32, -s, s)
    return {
        "w_ih":  u(ks[0], (hidden_size, input_size), k_rnn),   # weight_ih_l0
        "w_hh":  u(ks[1], (hidden_size, hidden_size), k_rnn),  # weight_hh_l0
        "b_ih":  u(ks[2], (hidden_size,), k_rnn),              # bias_ih_l0
        "b_hh":  u(ks[3], (hidden_size,), k_rnn),              # bias_hh_l0
        "w_out": u(ks[4], (output_size, hidden_size), k_lin),  # linear.weight
        "b_out": u(ks[5], (output_size,), k_lin),              # linear.bias
    }


def _reference(x, p):
    """Pure-JAX reference of the PyTorch forward, for a correctness check."""
    B, T, _ = x.shape
    H = p["w_hh"].shape[0]
    h = jnp.zeros((B, H), jnp.float32)
    for t in range(T):
        h = jnp.tanh(x[:, t] @ p["w_ih"].T + p["b_ih"]
                     + h @ p["w_hh"].T + p["b_hh"])
    return h @ p["w_out"].T + p["b_out"]


if __name__ == "__main__":
    key = jax.random.PRNGKey(0)
    k_x, k_p = jax.random.split(key)

    batch, seq, input_size, hidden_size, output_size = 4, 8, 16, 32, 8

    x = jax.random.normal(k_x, (batch, seq, input_size), dtype=jnp.float32)
    params = init_params(k_p, input_size, hidden_size, output_size)

    # f32 compute path for the demo (portable to v5e and the CPU interpreter,
    # which lacks bf16 dot support).  On v6e/v7x, pass
    # compute_dtype=jnp.bfloat16 to prepare_params to halve the xproj stream.
    prep = prepare_params(params, compute_dtype=jnp.float32)

    out = jax.block_until_ready(forecasting_stock_rnn(x, prep))
    ref = _reference(x, params)

    assert out.shape == (batch, output_size)
    assert jnp.allclose(out, ref, atol=1e-4, rtol=1e-4)

    print("KERNEL_OK")
</pallas_src>

<mosaic_0001>
module attributes {stable_mosaic.version = 11 : i64} {
  func.func @_rnn_forecast_kernel(%arg0: i32, %arg1: memref<8x8x128xf32, #tpu.memory_space<vmem>>, %arg2: memref<128x128xf32, #tpu.memory_space<vmem>>, %arg3: memref<128x128xf32, #tpu.memory_space<vmem>>, %arg4: memref<1x128xf32, #tpu.memory_space<vmem>>, %arg5: memref<8x128xf32, #tpu.memory_space<vmem>>, %arg6: memref<8x128xf32, #tpu.memory_space<vmem>>) attributes {dimension_semantics = [#tpu.dimension_semantics<arbitrary>], iteration_bounds = array<i64: 1>, scalar_prefetch = 0 : i64, scratch_operands = 1 : i64, tpu.core_type = #tpu.core_type<tc>, window_params = [{transform_indices = @transform_0, window_bounds = array<i64: 8, 8, 128>}, {pipeline_mode = #tpu.pipeline_mode<synchronous>, transform_indices = @transform_1, window_bounds = array<i64: 128, 128>}, {pipeline_mode = #tpu.pipeline_mode<synchronous>, transform_indices = @transform_2, window_bounds = array<i64: 128, 128>}, {pipeline_mode = #tpu.pipeline_mode<synchronous>, transform_indices = @transform_3, window_bounds = array<i64: 1, 128>}, {pipeline_mode = #tpu.pipeline_mode<synchronous>, transform_indices = @transform_4, window_bounds = array<i64: 8, 128>}]} {
    %c0_i32 = arith.constant 0 : i32
    %0 = arith.cmpi eq, %arg0, %c0_i32 : i32
    %1 = arith.extui %0 : i1 to i32
    %c0_i32_0 = arith.constant 0 : i32
    %2 = arith.cmpi ne, %1, %c0_i32_0 : i32
    scf.if %2 {
      %cst_32 = arith.constant 0.000000e+00 : f32
      %57 = vector.broadcast %cst_32 : f32 to vector<8x128xf32>
      %c0_33 = arith.constant 0 : index
      %c0_34 = arith.constant 0 : index
      %58 = vector.load %arg6[%c0_33, %c0_34] : memref<8x128xf32, #tpu.memory_space<vmem>>, vector<8x128xf32>
      tpu.vector_store %arg6[%c0_33, %c0_34], %57 {strides = array<i32>} : memref<8x128xf32, #tpu.memory_space<vmem>>, vector<8x128xf32>,
    } else {
    }
    %c0 = arith.constant 0 : index
    %c0_1 = arith.constant 0 : index
    %3 = vector.load %arg2[%c0, %c0_1] : memref<128x128xf32, #tpu.memory_space<vmem>>, vector<128x128xf32>
    %c0_2 = arith.constant 0 : index
    %c0_3 = arith.constant 0 : index
    %4 = vector.load %arg6[%c0_2, %c0_3] : memref<8x128xf32, #tpu.memory_space<vmem>>, vector<8x128xf32>
    %c0_i32_4 = arith.constant 0 : i32
    %cst = arith.constant dense<0.000000e+00> : vector<8x128xf32>
    %5 = tpu.matmul %4, %3, %cst {dimension_numbers = #tpu.dot_dimension_numbers<[1], [0], [0], [1], [0, 0, 1, 1], [], []>} : vector<8x128xf32>, vector<128x128xf32>, vector<8x128xf32> -> vector<8x128xf32>
    %6 = arith.index_cast %c0_i32_4 : i32 to index
    %c0_5 = arith.constant 0 : index
    %c0_6 = arith.constant 0 : index
    %7 = vector.load %arg1[%6, %c0_5, %c0_6] : memref<8x8x128xf32, #tpu.memory_space<vmem>>, vector<1x8x128xf32>
    %8 = vector.shape_cast %7 : vector<1x8x128xf32> to vector<8x128xf32>
    %9 = arith.addf %5, %8 : vector<8x128xf32>
    %10 = math.tanh %9 : vector<8x128xf32>
    %c1_i32 = arith.constant 1 : i32
    %cst_7 = arith.constant dense<0.000000e+00> : vector<8x128xf32>
    %11 = tpu.matmul %10, %3, %cst_7 {dimension_numbers = #tpu.dot_dimension_numbers<[1], [0], [0], [1], [0, 0, 1, 1], [], []>} : vector<8x128xf32>, vector<128x128xf32>, vector<8x128xf32> -> vector<8x128xf32>
    %12 = arith.index_cast %c1_i32 : i32 to index
    %c0_8 = arith.constant 0 : index
    %c0_9 = arith.constant 0 : index
    %13 = vector.load %arg1[%12, %c0_8, %c0_9] : memref<8x8x128xf32, #tpu.memory_space<vmem>>, vector<1x8x128xf32>
    %14 = vector.shape_cast %13 : vector<1x8x128xf32> to vector<8x128xf32>
    %15 = arith.addf %11, %14 : vector<8x128xf32>
    %16 = math.tanh %15 : vector<8x128xf32>
    %c2_i32 = arith.constant 2 : i32
    %cst_10 = arith.constant dense<0.000000e+00> : vector<8x128xf32>
    %17 = tpu.matmul %16, %3, %cst_10 {dimension_numbers = #tpu.dot_dimension_numbers<[1], [0], [0], [1], [0, 0, 1, 1], [], []>} : vector<8x128xf32>, vector<128x128xf32>, vector<8x128xf32> -> vector<8x128xf32>
    %18 = arith.index_cast %c2_i32 : i32 to index
    %c0_11 = arith.constant 0 : index
    %c0_12 = arith.constant 0 : index
    %19 = vector.load %arg1[%18, %c0_11, %c0_12] : memref<8x8x128xf32, #tpu.memory_space<vmem>>, vector<1x8x128xf32>
    %20 = vector.shape_cast %19 : vector<1x8x128xf32> to vector<8x128xf32>
    %21 = arith.addf %17, %20 : vector<8x128xf32>
    %22 = math.tanh %21 : vector<8x128xf32>
    %c3_i32 = arith.constant 3 : i32
    %cst_13 = arith.constant dense<0.000000e+00> : vector<8x128xf32>
    %23 = tpu.matmul %22, %3, %cst_13 {dimension_numbers = #tpu.dot_dimension_numbers<[1], [0], [0], [1], [0, 0, 1, 1], [], []>} : vector<8x128xf32>, vector<128x128xf32>, vector<8x128xf32> -> vector<8x128xf32>
    %24 = arith.index_cast %c3_i32 : i32 to index
    %c0_14 = arith.constant 0 : index
    %c0_15 = arith.constant 0 : index
    %25 = vector.load %arg1[%24, %c0_14, %c0_15] : memref<8x8x128xf32, #tpu.memory_space<vmem>>, vector<1x8x128xf32>
    %26 = vector.shape_cast %25 : vector<1x8x128xf32> to vector<8x128xf32>
    %27 = arith.addf %23, %26 : vector<8x128xf32>
    %28 = math.tanh %27 : vector<8x128xf32>
    %c4_i32 = arith.constant 4 : i32
    %cst_16 = arith.constant dense<0.000000e+00> : vector<8x128xf32>
    %29 = tpu.matmul %28, %3, %cst_16 {dimension_numbers = #tpu.dot_dimension_numbers<[1], [0], [0], [1], [0, 0, 1, 1], [], []>} : vector<8x128xf32>, vector<128x128xf32>, vector<8x128xf32> -> vector<8x128xf32>
    %30 = arith.index_cast %c4_i32 : i32 to index
    %c0_17 = arith.constant 0 : index
    %c0_18 = arith.constant 0 : index
    %31 = vector.load %arg1[%30, %c0_17, %c0_18] : memref<8x8x128xf32, #tpu.memory_space<vmem>>, vector<1x8x128xf32>
    %32 = vector.shape_cast %31 : vector<1x8x128xf32> to vector<8x128xf32>
    %33 = arith.addf %29, %32 : vector<8x128xf32>
    %34 = math.tanh %33 : vector<8x128xf32>
    %c5_i32 = arith.constant 5 : i32
    %cst_19 = arith.constant dense<0.000000e+00> : vector<8x128xf32>
    %35 = tpu.matmul %34, %3, %cst_19 {dimension_numbers = #tpu.dot_dimension_numbers<[1], [0], [0], [1], [0, 0, 1, 1], [], []>} : vector<8x128xf32>, vector<128x128xf32>, vector<8x128xf32> -> vector<8x128xf32>
    %36 = arith.index_cast %c5_i32 : i32 to index
    %c0_20 = arith.constant 0 : index
    %c0_21 = arith.constant 0 : index
    %37 = vector.load %arg1[%36, %c0_20, %c0_21] : memref<8x8x128xf32, #tpu.memory_space<vmem>>, vector<1x8x128xf32>
    %38 = vector.shape_cast %37 : vector<1x8x128xf32> to vector<8x128xf32>
    %39 = arith.addf %35, %38 : vector<8x128xf32>
    %40 = math.tanh %39 : vector<8x128xf32>
    %c6_i32 = arith.constant 6 : i32
    %cst_22 = arith.constant dense<0.000000e+00> : vector<8x128xf32>
    %41 = tpu.matmul %40, %3, %cst_22 {dimension_numbers = #tpu.dot_dimension_numbers<[1], [0], [0], [1], [0, 0, 1, 1], [], []>} : vector<8x128xf32>, vector<128x128xf32>, vector<8x128xf32> -> vector<8x128xf32>
    %42 = arith.index_cast %c6_i32 : i32 to index
    %c0_23 = arith.constant 0 : index
    %c0_24 = arith.constant 0 : index
    %43 = vector.load %arg1[%42, %c0_23, %c0_24] : memref<8x8x128xf32, #tpu.memory_space<vmem>>, vector<1x8x128xf32>
    %44 = vector.shape_cast %43 : vector<1x8x128xf32> to vector<8x128xf32>
    %45 = arith.addf %41, %44 : vector<8x128xf32>
    %46 = math.tanh %45 : vector<8x128xf32>
    %c7_i32 = arith.constant 7 : i32
    %cst_25 = arith.constant dense<0.000000e+00> : vector<8x128xf32>
    %47 = tpu.matmul %46, %3, %cst_25 {dimension_numbers = #tpu.dot_dimension_numbers<[1], [0], [0], [1], [0, 0, 1, 1], [], []>} : vector<8x128xf32>, vector<128x128xf32>, vector<8x128xf32> -> vector<8x128xf32>
    %48 = arith.index_cast %c7_i32 : i32 to index
    %c0_26 = arith.constant 0 : index
    %c0_27 = arith.constant 0 : index
    %49 = vector.load %arg1[%48, %c0_26, %c0_27] : memref<8x8x128xf32, #tpu.memory_space<vmem>>, vector<1x8x128xf32>
    %50 = vector.shape_cast %49 : vector<1x8x128xf32> to vector<8x128xf32>
    %51 = arith.addf %47, %50 : vector<8x128xf32>
    %52 = math.tanh %51 : vector<8x128xf32>
    %c8_i32 = arith.constant 8 : i32
    %c0_28 = arith.constant 0 : index
    %c0_29 = arith.constant 0 : index
    %53 = vector.load %arg6[%c0_28, %c0_29] : memref<8x128xf32, #tpu.memory_space<vmem>>, vector<8x128xf32>
    tpu.vector_store %arg6[%c0_28, %c0_29], %52 {strides = array<i32>} : memref<8x128xf32, #tpu.memory_space<vmem>>, vector<8x128xf32>,
    %c0_i32_30 = arith.constant 0 : i32
    %54 = arith.cmpi eq, %arg0, %c0_i32_30 : i32
    %55 = arith.extui %54 : i1 to i32
    %c0_i32_31 = arith.constant 0 : i32
    %56 = arith.cmpi ne, %55, %c0_i32_31 : i32
    scf.if %56 {
      %c0_32 = arith.constant 0 : index
      %c0_33 = arith.constant 0 : index
      %57 = vector.load %arg3[%c0_32, %c0_33] : memref<128x128xf32, #tpu.memory_space<vmem>>, vector<128x128xf32>
      %cst_34 = arith.constant dense<0.000000e+00> : vector<8x128xf32>
      %58 = tpu.matmul %52, %57, %cst_34 {dimension_numbers = #tpu.dot_dimension_numbers<[1], [0], [0], [1], [0, 0, 1, 1], [], []>} : vector<8x128xf32>, vector<128x128xf32>, vector<8x128xf32> -> vector<8x128xf32>
      %c0_35 = arith.constant 0 : index
      %c0_36 = arith.constant 0 : index
      %59 = vector.load %arg4[%c0_35, %c0_36] : memref<1x128xf32, #tpu.memory_space<vmem>>, vector<1x128xf32>
      %60 = vector.broadcast %59 : vector<1x128xf32> to vector<8x128xf32>
      %61 = arith.addf %58, %60 : vector<8x128xf32>
      %c0_37 = arith.constant 0 : index
      %c0_38 = arith.constant 0 : index
      %62 = vector.load %arg5[%c0_37, %c0_38] : memref<8x128xf32, #tpu.memory_space<vmem>>, vector<8x128xf32>
      tpu.vector_store %arg5[%c0_37, %c0_38], %61 {strides = array<i32>} : memref<8x128xf32, #tpu.memory_space<vmem>>, vector<8x128xf32>,
    } else {
    }
    return
  }
  func.func @transform_0(%arg0: i32) -> (i32, i32, i32) {
    %c0_i32 = arith.constant 0 : i32
    %c0_i32_0 = arith.constant 0 : i32
    %c0_i32_1 = arith.constant 0 : i32
    return %arg0, %c0_i32, %c0_i32_0 : i32, i32, i32
  }
  func.func @transform_1(%arg0: i32) -> (i32, i32) {
    %c0_i32 = arith.constant 0 : i32
    %c0_i32_0 = arith.constant 0 : i32
    %c0_i32_1 = arith.constant 0 : i32
    return %c0_i32, %c0_i32_0 : i32, i32
  }
  func.func @transform_2(%arg0: i32) -> (i32, i32) {
    %c0_i32 = arith.constant 0 : i32
    %c0_i32_0 = arith.constant 0 : i32
    %c0_i32_1 = arith.constant 0 : i32
    return %c0_i32, %c0_i32_0 : i32, i32
  }
  func.func @transform_3(%arg0: i32) -> (i32, i32) {
    %c0_i32 = arith.constant 0 : i32
    %c0_i32_0 = arith.constant 0 : i32
    %c0_i32_1 = arith.constant 0 : i32
    return %c0_i32, %c0_i32_0 : i32, i32
  }
  func.func @transform_4(%arg0: i32) -> (i32, i32) {
    %c0_i32 = arith.constant 0 : i32
    %c0_i32_0 = arith.constant 0 : i32
    %c0_i32_1 = arith.constant 0 : i32
    return %c0_i32, %c0_i32_0 : i32, i32
  }
}

</mosaic_0001>

<bundles_post_ra>
// kernel: tpu_custom_call.1
= control target key start
LH: loop header
LB: loop body
LE: loop exit
PB: predicated region body
PF: predicated region fallthrough
CT: control target
= control target key end

     0   :  { %9 = vsyncpa [#allocation4], 0  ;;  %s666_s0 = inlined_call_operand.hbm [shape: f32[8,8,128], index: 0, kind: input, shape index: {}]   ;;  %s667_s1 = inlined_call_operand.hbm [shape: f32[128,128], index: 1, kind: input, shape index: {}]   ;;  %s668_s2 = inlined_call_operand.hbm [shape: f32[128,128], index: 2, kind: input, shape index: {}]   ;;  %s669_s3 = inlined_call_operand.vmem [shape: f32[1,128], index: 3, kind: input, shape index: {}]   ;;  %s670_s4 = inlined_call_operand.hbm [shape: f32[8,128], index: 4, kind: output, shape index: {}]  }
   0x1   :  { %10 = vsyncpa [#allocation7], 0 }
   0x2   :  { %11 = vsyncpa [#allocation5], 0  ;;  %s29_s17 = sshll.u32 %s667_s1, 4  ;;  %s459_s18 = smov [#allocation6]   ;;  %s30_s17 = int_to_ptr.hbm [resolvable:$true] %s29_s17 }
   0x3   :  { %s31_s19 = sshll.u32 %s459_s18, 4  ;;  %s16_s22 = sshll.u32 %s666_s0, 4  ;;  %s32_s19 = int_to_ptr.vmem [resolvable:$true] %s31_s19  ;;  %s17_s22 = int_to_ptr.hbm [resolvable:$true] %s16_s22 }
   0x4   :  { %s460_s23 = smov 128   ;;  %s461_s24 = smov 8  }
   0x5   :  { %37 = dma.hbm_to_vmem [thread:$0]  %s30_s17, 2048, %s32_s19, [#allocation7], %s460_s23, %s460_s23, %s461_s24  }
   0x6   :  { %s462_s25 = smov [#allocation3]   ;;  %s42_s29 = sshll.u32 %s668_s2, 4  ;;  %s43_s29 = int_to_ptr.hbm [resolvable:$true] %s42_s29 }
   0x7   :  { %s18_s26 = sshll.u32 %s462_s25, 4  ;;  %s463_s1 = smov [#allocation8]   ;;  %s19_s26 = int_to_ptr.vmem [resolvable:$true] %s18_s26 }
   0x8   :  { %24 = dma.hbm_to_vmem [thread:$0]  %s17_s22, 1024, %s19_s26, [#allocation4], %s460_s23, %s460_s23, %s461_s24  }
   0x9   :  { %s44_s30 = sshll.u32 %s463_s1, 4  ;;  %s45_s30 = int_to_ptr.vmem [resolvable:$true] %s44_s30 }
   0xa   :  { %50 = dma.hbm_to_vmem [thread:$0]  %s43_s29, 2048, %s45_s30, [#allocation7], %s460_s23, %s460_s23, %s461_s24  }
   0xb   :  { %453 = dma.done.wait [#allocation4], 1024  }
   0xc   :  { %454 = vsyncadd [#allocation4], 4294966272 }
   0xd   :  { %455 = dma.done.wait [#allocation7], 4096  }
   0xe   :  { %456 = vsyncadd [#allocation7], 4294963200  ;;  %v500_v0 = vld [vmem:[#allocation6 + $0x78] sm:$0xff]  ;;  %v502_v1 = vld [vmem:[#allocation6 + $0x70] sm:$0xff]  ;;  %v464_v16 = vmov 0.0   ;;  %s465_s5 = smov [#allocation9]  }
   0xf   :  { %88 = vmatpush.msra.mxu0 %v500_v0  ;;  %111 = vmatpush.msra.mxu1 %v500_v0  ;;  %v506_v2 = vld [vmem:[#allocation6 + $0x68] sm:$0xff]  ;;  %v512_v3 = vld [vmem:[#allocation6 + $0x60] sm:$0xff]  ;;  %v518_v4 = vld [vmem:[#allocation6 + $0x58] sm:$0xff]  ;;  %s320_s6 = sshll.u32 %s465_s5, 4  ;;  %s322_s9 = sshll.u32 %s670_s4, 4  ;;  %s321_s6 = int_to_ptr.vmem [resolvable:$true] %s320_s6  ;;  %s323_s9 = int_to_ptr.hbm [resolvable:$true] %s322_s9 }
  0x10   :  { %134 = vmatpush.msra.mxu2 %v500_v0  ;;  %157 = vmatpush.msra.mxu3 %v500_v0  ;;  %v524_v5 = vld [vmem:[#allocation6 + $0x50] sm:$0xff]  ;;  %v530_v6 = vld [vmem:[#allocation6 + $0x48] sm:$0xff]  ;;  %v536_v7 = vld [vmem:[#allocation6 + $0x40] sm:$0xff] }
  0x11   :  { %89 = vmatpush.msra.mxu0 %v502_v1  ;;  %112 = vmatpush.msra.mxu1 %v502_v1  ;;  %v542_v8 = vld [vmem:[#allocation6 + $0x38] sm:$0xff]  ;;  %v548_v9 = vld [vmem:[#allocation6 + $0x30] sm:$0xff]  ;;  %v554_v10 = vld [vmem:[#allocation6 + $0x28] sm:$0xff] }
  0x12   :  { %135 = vmatpush.msra.mxu2 %v502_v1  ;;  %158 = vmatpush.msra.mxu3 %v502_v1  ;;  %v560_v11 = vld [vmem:[#allocation6 + $0x20] sm:$0xff]  ;;  %v566_v12 = vld [vmem:[#allocation6 + $0x18] sm:$0xff]  ;;  %v572_v13 = vld [vmem:[#allocation6 + $0x10] sm:$0xff] }
  0x13   :  { %90 = vmatpush.msra.mxu0 %v506_v2  ;;  %113 = vmatpush.msra.mxu1 %v506_v2  ;;  %v578_v14 = vld [vmem:[#allocation6 + $0x8] sm:$0xff]  ;;  %v584_v15 = vld [vmem:[#allocation6] sm:$0xff]  ;;  %v133_v25 = vld [vmem:[#allocation3 + $0x10] sm:$0xff] }
  0x14   :  { %136 = vmatpush.msra.mxu2 %v506_v2  ;;  %159 = vmatpush.msra.mxu3 %v506_v2  ;;  %v87_v17 = vld [vmem:[#allocation3] sm:$0xff]  ;;  %v110_v21 = vld [vmem:[#allocation3 + $0x8] sm:$0xff]  ;;  %v156_v29 = vld [vmem:[#allocation3 + $0x18] sm:$0xff] }
  0x15   :  { %91 = vmatpush.msra.mxu0 %v512_v3  ;;  %114 = vmatpush.msra.mxu1 %v512_v3  ;;  %v179_v33 = vld [vmem:[#allocation3 + $0x20] sm:$0xff]  ;;  %v202_v37 = vld [vmem:[#allocation3 + $0x28] sm:$0xff]  ;;  %v289_v41 = vld [vmem:[#allocation8 + $0x78] sm:$0xff] }
  0x16   :  { %137 = vmatpush.msra.mxu2 %v512_v3  ;;  %160 = vmatpush.msra.mxu3 %v512_v3  ;;  %v288_v42 = vld [vmem:[#allocation8 + $0x70] sm:$0xff]  ;;  %v287_v43 = vld [vmem:[#allocation8 + $0x68] sm:$0xff]  ;;  %v286_v44 = vld [vmem:[#allocation8 + $0x60] sm:$0xff] }
  0x17   :  { %92 = vmatpush.msra.mxu0 %v518_v4  ;;  %115 = vmatpush.msra.mxu1 %v518_v4  ;;  %v285_v45 = vld [vmem:[#allocation8 + $0x58] sm:$0xff]  ;;  %v284_v46 = vld [vmem:[#allocation8 + $0x50] sm:$0xff]  ;;  %v283_v47 = vld [vmem:[#allocation8 + $0x48] sm:$0xff] }
  0x18   :  { %138 = vmatpush.msra.mxu2 %v518_v4  ;;  %161 = vmatpush.msra.mxu3 %v518_v4  ;;  %v282_v48 = vld [vmem:[#allocation8 + $0x40] sm:$0xff]  ;;  %v281_v49 = vld [vmem:[#allocation8 + $0x38] sm:$0xff]  ;;  %v280_v50 = vld [vmem:[#allocation8 + $0x30] sm:$0xff] }
  0x19   :  { %93 = vmatpush.msra.mxu0 %v524_v5  ;;  %116 = vmatpush.msra.mxu1 %v524_v5  ;;  %v279_v51 = vld [vmem:[#allocation8 + $0x28] sm:$0xff]  ;;  %v225_v52 = vld [vmem:[#allocation3 + $0x30] sm:$0xff]  ;;  %v278_v56 = vld [vmem:[#allocation8 + $0x20] sm:$0xff] }
  0x1a   :  { %139 = vmatpush.msra.mxu2 %v524_v5  ;;  %162 = vmatpush.msra.mxu3 %v524_v5  ;;  %v277_v57 = vld [vmem:[#allocation8 + $0x18] sm:$0xff]  ;;  %v276_v58 = vld [vmem:[#allocation8 + $0x10] sm:$0xff]  ;;  %v275_v59 = vld [vmem:[#allocation8 + $0x8] sm:$0xff] }
  0x1b   :  { %94 = vmatpush.msra.mxu0 %v530_v6  ;;  %117 = vmatpush.msra.mxu1 %v530_v6  ;;  %v274_v60 = vld [vmem:[#allocation8] sm:$0xff]  ;;  %v248_v61 = vld [vmem:[#allocation3 + $0x38] sm:$0xff] }
  0x1c   :  { %140 = vmatpush.msra.mxu2 %v530_v6  ;;  %163 = vmatpush.msra.mxu3 %v530_v6 }
  0x1d   :  { %95 = vmatpush.msra.mxu0 %v536_v7  ;;  %118 = vmatpush.msra.mxu1 %v536_v7 }
  0x1e   :  { %141 = vmatpush.msra.mxu2 %v536_v7  ;;  %164 = vmatpush.msra.mxu3 %v536_v7 }
  0x1f   :  { %96 = vmatpush.msra.mxu0 %v542_v8  ;;  %119 = vmatpush.msra.mxu1 %v542_v8 }
  0x20   :  { %142 = vmatpush.msra.mxu2 %v542_v8  ;;  %165 = vmatpush.msra.mxu3 %v542_v8 }
  0x21   :  { %97 = vmatpush.msra.mxu0 %v548_v9  ;;  %120 = vmatpush.msra.mxu1 %v548_v9 }
  0x22   :  { %143 = vmatpush.msra.mxu2 %v548_v9  ;;  %166 = vmatpush.msra.mxu3 %v548_v9 }
  0x23   :  { %98 = vmatpush.msra.mxu0 %v554_v10  ;;  %121 = vmatpush.msra.mxu1 %v554_v10 }
  0x24   :  { %144 = vmatpush.msra.mxu2 %v554_v10  ;;  %167 = vmatpush.msra.mxu3 %v554_v10 }
  0x25   :  { %99 = vmatpush.msra.mxu0 %v560_v11  ;;  %122 = vmatpush.msra.mxu1 %v560_v11 }
  0x26   :  { %145 = vmatpush.msra.mxu2 %v560_v11  ;;  %168 = vmatpush.msra.mxu3 %v560_v11 }
  0x27   :  { %100 = vmatpush.msra.mxu0 %v566_v12  ;;  %123 = vmatpush.msra.mxu1 %v566_v12 }
  0x28   :  { %146 = vmatpush.msra.mxu2 %v566_v12  ;;  %169 = vmatpush.msra.mxu3 %v566_v12 }
  0x29   :  { %101 = vmatpush.msra.mxu0 %v572_v13  ;;  %124 = vmatpush.msra.mxu1 %v572_v13 }
  0x2a   :  { %147 = vmatpush.msra.mxu2 %v572_v13  ;;  %170 = vmatpush.msra.mxu3 %v572_v13 }
  0x2b   :  { %102 = vmatpush.msra.mxu0 %v578_v14  ;;  %125 = vmatpush.msra.mxu1 %v578_v14 }
  0x2c   :  { %148 = vmatpush.msra.mxu2 %v578_v14  ;;  %171 = vmatpush.msra.mxu3 %v578_v14 }
  0x2d   :  { %103 = vmatpush.msra.mxu0 %v584_v15  ;;  %126 = vmatpush.msra.mxu1 %v584_v15 }
  0x2e   :  { %104 = vmatmul.f32.vlgmr.msra.gmra.mxu0 %v464_v16  ;;  %149 = vmatpush.msra.mxu2 %v584_v15 }
  0x2f   :  { %172 = vmatpush.msra.mxu3 %v584_v15  ;;  %180 = vmatpush.msrb.mxu0 %v500_v0 }
  0x30   :  { %203 = vmatpush.msrb.mxu1 %v500_v0  ;;  %226 = vmatpush.msrb.mxu2 %v500_v0 }
  0x31   :  { %181 = vmatpush.msrb.mxu0 %v502_v1  ;;  %249 = vmatpush.msrb.mxu3 %v500_v0 }
  0x32   :  { %204 = vmatpush.msrb.mxu1 %v502_v1  ;;  %227 = vmatpush.msrb.mxu2 %v502_v1 }
  0x33   :  { %182 = vmatpush.msrb.mxu0 %v506_v2  ;;  %250 = vmatpush.msrb.mxu3 %v502_v1  ;;  %v340_v1 = vld [vmem:[%s669_s3] ss:$0 sm:$0xff] }
  0x34   :  { %205 = vmatpush.msrb.mxu1 %v506_v2  ;;  %228 = vmatpush.msrb.mxu2 %v506_v2 }
  0x35   :  { %183 = vmatpush.msrb.mxu0 %v512_v3  ;;  %251 = vmatpush.msrb.mxu3 %v506_v2 }
  0x36   :  { %206 = vmatpush.msrb.mxu1 %v512_v3  ;;  %229 = vmatpush.msrb.mxu2 %v512_v3 }
  0x37   :  { %184 = vmatpush.msrb.mxu0 %v518_v4  ;;  %252 = vmatpush.msrb.mxu3 %v512_v3 }
  0x38   :  { %207 = vmatpush.msrb.mxu1 %v518_v4  ;;  %230 = vmatpush.msrb.mxu2 %v518_v4 }
  0x39   :  { %185 = vmatpush.msrb.mxu0 %v524_v5  ;;  %253 = vmatpush.msrb.mxu3 %v518_v4 }
  0x3a   :  { %208 = vmatpush.msrb.mxu1 %v524_v5  ;;  %231 = vmatpush.msrb.mxu2 %v524_v5 }
  0x3b   :  { %186 = vmatpush.msrb.mxu0 %v530_v6  ;;  %254 = vmatpush.msrb.mxu3 %v524_v5 }
  0x3c   :  { %209 = vmatpush.msrb.mxu1 %v530_v6  ;;  %232 = vmatpush.msrb.mxu2 %v530_v6 }
  0x3d   :  { %187 = vmatpush.msrb.mxu0 %v536_v7  ;;  %255 = vmatpush.msrb.mxu3 %v530_v6 }
  0x3e   :  { %210 = vmatpush.msrb.mxu1 %v536_v7  ;;  %233 = vmatpush.msrb.mxu2 %v536_v7 }
  0x3f   :  { %188 = vmatpush.msrb.mxu0 %v542_v8  ;;  %256 = vmatpush.msrb.mxu3 %v536_v7 }
  0x40   :  { %211 = vmatpush.msrb.mxu1 %v542_v8  ;;  %234 = vmatpush.msrb.mxu2 %v542_v8 }
  0x41   :  { %189 = vmatpush.msrb.mxu0 %v548_v9  ;;  %257 = vmatpush.msrb.mxu3 %v542_v8 }
  0x42   :  { %212 = vmatpush.msrb.mxu1 %v548_v9  ;;  %235 = vmatpush.msrb.mxu2 %v548_v9 }
  0x43   :  { %190 = vmatpush.msrb.mxu0 %v554_v10  ;;  %258 = vmatpush.msrb.mxu3 %v548_v9 }
  0x44   :  { %213 = vmatpush.msrb.mxu1 %v554_v10  ;;  %236 = vmatpush.msrb.mxu2 %v554_v10 }
  0x45   :  { %191 = vmatpush.msrb.mxu0 %v560_v11  ;;  %259 = vmatpush.msrb.mxu3 %v554_v10 }
  0x46   :  { %214 = vmatpush.msrb.mxu1 %v560_v11  ;;  %237 = vmatpush.msrb.mxu2 %v560_v11 }
  0x47   :  { %192 = vmatpush.msrb.mxu0 %v566_v12  ;;  %260 = vmatpush.msrb.mxu3 %v560_v11 }
  0x48   :  { %215 = vmatpush.msrb.mxu1 %v566_v12  ;;  %238 = vmatpush.msrb.mxu2 %v566_v12 }
  0x49   :  { %193 = vmatpush.msrb.mxu0 %v572_v13  ;;  %261 = vmatpush.msrb.mxu3 %v566_v12 }
  0x4a   :  { %216 = vmatpush.msrb.mxu1 %v572_v13  ;;  %239 = vmatpush.msrb.mxu2 %v572_v13 }
  0x4b   :  { %194 = vmatpush.msrb.mxu0 %v578_v14  ;;  %262 = vmatpush.msrb.mxu3 %v572_v13 }
  0x4c   :  { %217 = vmatpush.msrb.mxu1 %v578_v14  ;;  %240 = vmatpush.msrb.mxu2 %v578_v14 }
  0x4d   :  { %195 = vmatpush.msrb.mxu0 %v584_v15  ;;  %263 = vmatpush.msrb.mxu3 %v578_v14 }
  0x4e   :  { %218 = vmatpush.msrb.mxu1 %v584_v15  ;;  %241 = vmatpush.msrb.mxu2 %v584_v15 }
  0x4f   :  { %264 = vmatpush.msrb.mxu3 %v584_v15  ;;  %294 = vmatpush.msra.mxu0 %v289_v41 }
  0x51   :  { %295 = vmatpush.msra.mxu0 %v288_v42 }
  0x53   :  { %296 = vmatpush.msra.mxu0 %v287_v43 }
  0x55   :  { %297 = vmatpush.msra.mxu0 %v286_v44 }
  0x57   :  { %298 = vmatpush.msra.mxu0 %v285_v45 }
  0x59   :  { %299 = vmatpush.msra.mxu0 %v284_v46 }
  0x5b   :  { %300 = vmatpush.msra.mxu0 %v283_v47 }
  0x5d   :  { %301 = vmatpush.msra.mxu0 %v282_v48 }
  0x5f   :  { %302 = vmatpush.msra.mxu0 %v281_v49 }
  0x61   :  { %303 = vmatpush.msra.mxu0 %v280_v50 }
  0x63   :  { %304 = vmatpush.msra.mxu0 %v279_v51 }
  0x65   :  { %305 = vmatpush.msra.mxu0 %v278_v56 }
  0x67   :  { %306 = vmatpush.msra.mxu0 %v277_v57 }
  0x69   :  { %307 = vmatpush.msra.mxu0 %v276_v58 }
  0x6b   :  { %308 = vmatpush.msra.mxu0 %v275_v59 }
  0x6d   :  { %309 = vmatpush.msra.mxu0 %v274_v60 }
  0xab   :  { %v105_v18 = vpop.f32.mrf.mxu0 }
  0xac   :  { %v106_v19 = vadd.f32 %v105_v18, %v87_v17 }
  0xae   :  { %341 = vtanh.f32 %v106_v19 }
  0xb4   :  { %v342_v20 = vpop.eup %341 }
  0xb5   :  { %127 = vmatmul.f32.vlgmr.msra.gmra.mxu1 %v342_v20 }
 0x132   :  { %v128_v22 = vpop.f32.mrf.mxu1 }
 0x133   :  { %v129_v23 = vadd.f32 %v128_v22, %v110_v21 }
 0x135   :  { %343 = vtanh.f32 %v129_v23 }
 0x13b   :  { %v344_v24 = vpop.eup %343 }
 0x13c   :  { %150 = vmatmul.f32.vlgmr.msra.gmra.mxu2 %v344_v24 }
 0x1bf   :  { %v151_v26 = vpop.f32.mrf.mxu2 }
 0x1c0   :  { %v152_v27 = vadd.f32 %v151_v26, %v133_v25 }
 0x1c2   :  { %345 = vtanh.f32 %v152_v27 }
 0x1c8   :  { %v346_v28 = vpop.eup %345 }
 0x1c9   :  { %173 = vmatmul.f32.vlgmr.msra.gmra.mxu3 %v346_v28 }
 0x24c   :  { %v174_v30 = vpop.f32.mrf.mxu3 }
 0x24d   :  { %v175_v31 = vadd.f32 %v174_v30, %v156_v29 }
 0x24f   :  { %347 = vtanh.f32 %v175_v31 }
 0x255   :  { %v348_v32 = vpop.eup %347 }
 0x256   :  { %196 = vmatmul.f32.vlgmr.msrb.gmra.mxu0 %v348_v32 }
 0x2d3   :  { %v197_v34 = vpop.f32.mrf.mxu0 }
 0x2d4   :  { %v198_v35 = vadd.f32 %v197_v34, %v179_v33 }
 0x2d6   :  { %349 = vtanh.f32 %v198_v35 }
 0x2dc   :  { %v350_v36 = vpop.eup %349 }
 0x2dd   :  { %219 = vmatmul.f32.vlgmr.msrb.gmra.mxu1 %v350_v36 }
 0x35a   :  { %v220_v38 = vpop.f32.mrf.mxu1 }
 0x35b   :  { %v221_v39 = vadd.f32 %v220_v38, %v202_v37 }
 0x35d   :  { %351 = vtanh.f32 %v221_v39 }
 0x363   :  { %v352_v40 = vpop.eup %351 }
 0x364   :  { %242 = vmatmul.f32.vlgmr.msrb.gmra.mxu2 %v352_v40 }
 0x3e7   :  { %v243_v53 = vpop.f32.mrf.mxu2 }
 0x3e8   :  { %v244_v54 = vadd.f32 %v243_v53, %v225_v52 }
 0x3ea   :  { %353 = vtanh.f32 %v244_v54 }
 0x3f0   :  { %v354_v55 = vpop.eup %353 }
 0x3f1   :  { %265 = vmatmul.f32.vlgmr.msrb.gmra.mxu3 %v354_v55 }
 0x474   :  { %v266_v62 = vpop.f32.mrf.mxu3 }
 0x475   :  { %v267_v63 = vadd.f32 %v266_v62, %v248_v61 }
 0x477   :  { %355 = vtanh.f32 %v267_v63 }
 0x47d   :  { %v356_v0 = vpop.eup %355 }
 0x47e   :  { %310 = vmatmul.f32.vlgmr.msra.gmra.mxu0 %v356_v0 }
 0x4fb   :  { %v311_v2 = vpop.f32.mrf.mxu0 }
 0x4fc   :  { %v312_v3 = vadd.f32 %v340_v1, %v311_v2 }
 0x4fe   :  { %314 = vst [vmem:[#allocation9] sm:$0xff] %v312_v3 }
 0x4ff   :  { %325 = dma.vmem_to_hbm [thread:$0]  %s321_s6, 128, %s323_s9, [#allocation5]  }
 0x500   :  { %457 = dma.done.wait [#allocation5], 128  }
 0x501   :  { %458 = vsyncadd [#allocation5], 4294967168 }
 0x502   :  { %330 = vsyncpa [#allocation4], 1 }
 0x503   :  { %331 = vsyncpa [#allocation7], 1 }
 0x504   :  { %332 = vsyncpa [#allocation5], 1 }

</bundles_post_ra>
